<compile_context>
chip_gen: v6e
topology: v6e:2x2x1
jax: 0.10.0
libtpu: 0.0.40
codegen_flags: <defaults>
</compile_context>

<pallas_src>
import jax
import jax.numpy as jnp
from jax.experimental import pallas as pl
from jax.experimental.pallas import tpu as pltpu

MAX_LEN = 30          # tokenizer max_length
L_TILE = 32           # length rounded up to a sublane multiple (extra rows unused)
KSIZE = 4             # conv kernel size
PAD = 2               # conv padding
C_IN = 768            # GPT2 hidden size (conv in_channels)
C_OUT = 20            # conv out_channels
POOL = 4              # MaxPool1d kernel size
N_CLASSES = 2         # fc out_features

L_CONV = MAX_LEN + 2 * PAD - KSIZE + 1    # 31
L_POOL_COVER = (L_CONV // POOL) * POOL    # 28 positions covered by MaxPool1d(4)


def _round_up(x, m):
    return (x + m - 1) // m * m


def grammarflaw_kernel(z_ref, bconv_ref, wfc_ref, bfc_ref, out_ref):
    # z_ref     : (B_BLK, L_TILE, KSIZE*C_OUT) f32  fused (embedding @ conv-tap) rows
    #             tap k occupies lanes [k*C_OUT, (k+1)*C_OUT); rows 30,31 unused.
    # bconv_ref : (1, C_OUT)               f32
    # wfc_ref   : (N_CLASSES, C_OUT)       f32   (PyTorch Linear layout)
    # bfc_ref   : (N_CLASSES, 1)           f32
    # out_ref   : (N_CLASSES, B_BLK)       f32   lane-dense transposed logits
    z = z_ref[...]                                             # (B_BLK, 32, 80)
    z0 = z[:, :, 0 * C_OUT:1 * C_OUT]                          # tap k=0
    z1 = z[:, :, 1 * C_OUT:2 * C_OUT]                          # tap k=1
    z2 = z[:, :, 2 * C_OUT:3 * C_OUT]                          # tap k=2
    z3 = z[:, :, 3 * C_OUT:4 * C_OUT]                          # tap k=3

    b = bconv_ref[...]                                         # (1, C_OUT)
    lp = L_POOL_COVER                                          # 28

    # conv output y[t] = z0[t-2] + z1[t-1] + z2[t] + z3[t+1]  (missing taps -> 0)
    # Interior positions t = 2 .. 27 (all four taps valid):
    core = (z0[:, 0:lp - 2] + z1[:, 1:lp - 1]
            + z2[:, 2:lp] + z3[:, 3:lp + 1])                   # (B_BLK, 26, C_OUT)
    core = jnp.maximum(core + b, 0.0)
    pooled = jnp.max(core, axis=1)                             # (B_BLK, C_OUT)

    # Edge positions t = 0, 1 (left conv padding):
    t0 = jnp.maximum(z2[:, 0] + z3[:, 1] + b, 0.0)             # (B_BLK, C_OUT)
    t1 = jnp.maximum(z1[:, 0] + z2[:, 1] + z3[:, 2] + b, 0.0)
    pooled = jnp.maximum(pooled, jnp.maximum(t0, t1))

    # MaxPool1d(4) over 31 positions followed by max over windows == max over
    # t = 0..27, which is what `pooled` holds. Final Linear(20, 2), emitted
    # transposed so the store is lane-dense along the batch block:
    logits_t = jnp.dot(wfc_ref[...], pooled.T,
                       preferred_element_type=jnp.float32) + bfc_ref[...]
    out_ref[...] = logits_t                                    # (N_CLASSES, B_BLK)


def prepare_params(emb_table, wconv, bconv, wfc, bfc):
    """Once-at-init: fold Conv1d weights into the embedding table (f32)."""
    # Conv weights (O, I, K) -> (I, K*O): column k*C_OUT + o holds wconv[o, :, k].
    wk = jnp.transpose(wconv, (1, 2, 0)).reshape(C_IN, KSIZE * C_OUT)
    fused_table = jnp.dot(emb_table.astype(jnp.float32),
                          wk.astype(jnp.float32))              # (VOCAB, 80)
    return {
        "table": fused_table,
        "bconv": bconv.reshape(1, C_OUT).astype(jnp.float32),
        "wfc": wfc.astype(jnp.float32),                        # (N_CLASSES, C_OUT)
        "bfc": bfc.reshape(N_CLASSES, 1).astype(jnp.float32),
    }


def grammarflaw_forward(input_ids, params):
    """input_ids: (B, MAX_LEN) int32. Returns logits (B, N_CLASSES) float32."""
    B = input_ids.shape[0]
    if B <= 256:
        B_BLK = _round_up(max(B, 1), 8)     # single block, == full out dim
    else:
        B_BLK = 256                         # multiple of 128 -> lane-dense out blocks
    B_pad = _round_up(B, B_BLK)
    n_blocks = B_pad // B_BLK

    # Pad token ids (cheap, int32) for (a) batch rounding, (b) length 30 -> 32 so
    # the sublane axis is 8-aligned. The 2 extra length rows are never read.
    ids = jnp.pad(input_ids, ((0, B_pad - B), (0, L_TILE - MAX_LEN)))

    # Gather 80-wide fused (embedding @ conv-tap) rows: 320 B/token instead of a
    # 768-wide embedding.
    z = jnp.take(params["table"], ids, axis=0)                 # (B_pad, 32, 80) f32

    out_t = pl.pallas_call(
        grammarflaw_kernel,
        out_shape=jax.ShapeDtypeStruct((N_CLASSES, B_pad), jnp.float32),
        grid_spec=pltpu.PrefetchScalarGridSpec(
            num_scalar_prefetch=0,
            grid=(n_blocks,),
            in_specs=[
                pl.BlockSpec((B_BLK, L_TILE, KSIZE * C_OUT), lambda i: (i, 0, 0)),
                pl.BlockSpec((1, C_OUT), lambda i: (0, 0)),
                pl.BlockSpec((N_CLASSES, C_OUT), lambda i: (0, 0)),
                pl.BlockSpec((N_CLASSES, 1), lambda i: (0, 0)),
            ],
            out_specs=pl.BlockSpec((N_CLASSES, B_BLK), lambda i: (0, i)),
        ),
        compiler_params=pltpu.CompilerParams(
            dimension_semantics=("parallel",),
        ),
    )(z, params["bconv"], params["wfc"], params["bfc"])
    return jnp.transpose(out_t[:, :B])                         # (B, N_CLASSES)


def reference_forward(input_ids, emb_table, wconv, bconv, wfc, bfc):
    """Pure-JAX reference matching the PyTorch forward exactly (f32)."""
    x = jnp.take(emb_table, input_ids, axis=0)                       # (B, L, C)
    xt = jnp.transpose(x, (0, 2, 1))                                 # (B, C, L) = NCH
    y = jax.lax.conv_general_dilated(
        xt, wconv, window_strides=(1,), padding=[(PAD, PAD)],
        dimension_numbers=("NCH", "OIH", "NCH"))                     # (B, 20, 31)
    y = y + bconv[None, :, None]
    y = jnp.maximum(y, 0.0)
    B = y.shape[0]
    y = y[:, :, :L_POOL_COVER].reshape(B, C_OUT, -1, POOL).max(axis=3)  # MaxPool1d(4)
    y = y.max(axis=2)                                                # (B, 20)
    return y @ wfc.T + bfc                                           # (B, 2)


if __name__ == "__main__":
    VOCAB = 256
    BATCH = 2

    key = jax.random.PRNGKey(0)
    k_emb, k_wc, k_bc, k_wf, k_bf, k_ids = jax.random.split(key, 6)

    emb_table = jax.random.normal(k_emb, (VOCAB, C_IN), jnp.float32) * 0.02
    wconv = jax.random.normal(k_wc, (C_OUT, C_IN, KSIZE), jnp.float32) * 0.02
    bconv = jax.random.normal(k_bc, (C_OUT,), jnp.float32) * 0.02
    wfc = jax.random.normal(k_wf, (N_CLASSES, C_OUT), jnp.float32) * 0.1
    bfc = jax.random.normal(k_bf, (N_CLASSES,), jnp.float32) * 0.1

    input_ids = jax.random.randint(k_ids, (BATCH, MAX_LEN), 0, VOCAB, jnp.int32)

    # Fold conv weights into the embedding table once (init-time), then run forward.
    params = prepare_params(emb_table, wconv, bconv, wfc, bfc)
    params = jax.tree_util.tree_map(jax.block_until_ready, params)

    fwd = jax.jit(grammarflaw_forward)
    logits = fwd(input_ids, params)
    logits = jax.block_until_ready(logits)

    ref = reference_forward(input_ids, emb_table, wconv, bconv, wfc, bfc)
    ref = jax.block_until_ready(ref)

    assert logits.shape == (BATCH, N_CLASSES)
    # Everything is f32 now (fused table in f32) -> tight tolerance.
    assert jnp.allclose(logits, ref, atol=1e-3, rtol=1e-3), (logits, ref)
    print("KERNEL_OK")
</pallas_src>

<mosaic_0001>
module attributes {stable_mosaic.version = 11 : i64} {
  func.func @grammarflaw_kernel(%arg0: i32, %arg1: memref<8x32x80xf32, #tpu.memory_space<vmem>>, %arg2: memref<1x20xf32, #tpu.memory_space<vmem>>, %arg3: memref<2x20xf32, #tpu.memory_space<vmem>>, %arg4: memref<2x1xf32, #tpu.memory_space<vmem>>, %arg5: memref<2x8xf32, #tpu.memory_space<vmem>>) attributes {dimension_semantics = [#tpu.dimension_semantics<parallel>], iteration_bounds = array<i64: 1>, scalar_prefetch = 0 : i64, scratch_operands = 0 : i64, tpu.core_type = #tpu.core_type<tc>, window_params = [{transform_indices = @transform_0, window_bounds = array<i64: 8, 32, 80>}, {pipeline_mode = #tpu.pipeline_mode<synchronous>, transform_indices = @transform_1, window_bounds = array<i64: 1, 20>}, {pipeline_mode = #tpu.pipeline_mode<synchronous>, transform_indices = @transform_2, window_bounds = array<i64: 2, 20>}, {pipeline_mode = #tpu.pipeline_mode<synchronous>, transform_indices = @transform_3, window_bounds = array<i64: 2, 1>}, {transform_indices = @transform_4, window_bounds = array<i64: 2, 8>}]} {
    %c0 = arith.constant 0 : index
    %c0_0 = arith.constant 0 : index
    %c0_1 = arith.constant 0 : index
    %0 = vector.load %arg1[%c0, %c0_0, %c0_1] : memref<8x32x80xf32, #tpu.memory_space<vmem>>, vector<8x32x80xf32>
    %1 = vector.extract_strided_slice %0 {offsets = [0, 0, 0], sizes = [8, 32, 20], strides = [1, 1, 1]} : vector<8x32x80xf32> to vector<8x32x20xf32>
    %2 = vector.extract_strided_slice %0 {offsets = [0, 0, 20], sizes = [8, 32, 20], strides = [1, 1, 1]} : vector<8x32x80xf32> to vector<8x32x20xf32>
    %3 = vector.extract_strided_slice %0 {offsets = [0, 0, 40], sizes = [8, 32, 20], strides = [1, 1, 1]} : vector<8x32x80xf32> to vector<8x32x20xf32>
    %4 = vector.extract_strided_slice %0 {offsets = [0, 0, 60], sizes = [8, 32, 20], strides = [1, 1, 1]} : vector<8x32x80xf32> to vector<8x32x20xf32>
    %c0_2 = arith.constant 0 : index
    %c0_3 = arith.constant 0 : index
    %5 = vector.load %arg2[%c0_2, %c0_3] : memref<1x20xf32, #tpu.memory_space<vmem>>, vector<1x20xf32>
    %6 = vector.extract_strided_slice %1 {offsets = [0, 0, 0], sizes = [8, 26, 20], strides = [1, 1, 1]} : vector<8x32x20xf32> to vector<8x26x20xf32>
    %7 = vector.extract_strided_slice %2 {offsets = [0, 1, 0], sizes = [8, 26, 20], strides = [1, 1, 1]} : vector<8x32x20xf32> to vector<8x26x20xf32>
    %8 = arith.addf %6, %7 : vector<8x26x20xf32>
    %9 = vector.extract_strided_slice %3 {offsets = [0, 2, 0], sizes = [8, 26, 20], strides = [1, 1, 1]} : vector<8x32x20xf32> to vector<8x26x20xf32>
    %10 = arith.addf %8, %9 : vector<8x26x20xf32>
    %11 = vector.extract_strided_slice %4 {offsets = [0, 3, 0], sizes = [8, 26, 20], strides = [1, 1, 1]} : vector<8x32x20xf32> to vector<8x26x20xf32>
    %12 = arith.addf %10, %11 : vector<8x26x20xf32>
    %13 = vector.shape_cast %5 : vector<1x20xf32> to vector<1x1x20xf32>
    %14 = vector.broadcast %13 : vector<1x1x20xf32> to vector<8x26x20xf32>
    %15 = arith.addf %12, %14 : vector<8x26x20xf32>
    %cst = arith.constant 0.000000e+00 : f32
    %16 = vector.broadcast %cst : f32 to vector<8x26x20xf32>
    %17 = arith.maximumf %15, %16 : vector<8x26x20xf32>
    %cst_4 = arith.constant dense<0xFF800000> : vector<8x20xf32>
    %18 = vector.multi_reduction <maximumf>, %17, %cst_4 [1] : vector<8x26x20xf32> to vector<8x20xf32>
    %19 = vector.extract_strided_slice %3 {offsets = [0, 0, 0], sizes = [8, 1, 20], strides = [1, 1, 1]} : vector<8x32x20xf32> to vector<8x1x20xf32>
    %20 = vector.shape_cast %19 : vector<8x1x20xf32> to vector<8x20xf32>
    %21 = vector.extract_strided_slice %4 {offsets = [0, 1, 0], sizes = [8, 1, 20], strides = [1, 1, 1]} : vector<8x32x20xf32> to vector<8x1x20xf32>
    %22 = vector.shape_cast %21 : vector<8x1x20xf32> to vector<8x20xf32>
    %23 = arith.addf %20, %22 : vector<8x20xf32>
    %24 = vector.broadcast %5 : vector<1x20xf32> to vector<8x20xf32>
    %25 = arith.addf %23, %24 : vector<8x20xf32>
    %cst_5 = arith.constant 0.000000e+00 : f32
    %26 = vector.broadcast %cst_5 : f32 to vector<8x20xf32>
    %27 = arith.maximumf %25, %26 : vector<8x20xf32>
    %28 = vector.extract_strided_slice %2 {offsets = [0, 0, 0], sizes = [8, 1, 20], strides = [1, 1, 1]} : vector<8x32x20xf32> to vector<8x1x20xf32>
    %29 = vector.shape_cast %28 : vector<8x1x20xf32> to vector<8x20xf32>
    %30 = vector.extract_strided_slice %3 {offsets = [0, 1, 0], sizes = [8, 1, 20], strides = [1, 1, 1]} : vector<8x32x20xf32> to vector<8x1x20xf32>
    %31 = vector.shape_cast %30 : vector<8x1x20xf32> to vector<8x20xf32>
    %32 = arith.addf %29, %31 : vector<8x20xf32>
    %33 = vector.extract_strided_slice %4 {offsets = [0, 2, 0], sizes = [8, 1, 20], strides = [1, 1, 1]} : vector<8x32x20xf32> to vector<8x1x20xf32>
    %34 = vector.shape_cast %33 : vector<8x1x20xf32> to vector<8x20xf32>
    %35 = arith.addf %32, %34 : vector<8x20xf32>
    %36 = vector.broadcast %5 : vector<1x20xf32> to vector<8x20xf32>
    %37 = arith.addf %35, %36 : vector<8x20xf32>
    %cst_6 = arith.constant 0.000000e+00 : f32
    %38 = vector.broadcast %cst_6 : f32 to vector<8x20xf32>
    %39 = arith.maximumf %37, %38 : vector<8x20xf32>
    %40 = arith.maximumf %27, %39 : vector<8x20xf32>
    %41 = arith.maximumf %18, %40 : vector<8x20xf32>
    %c0_7 = arith.constant 0 : index
    %c0_8 = arith.constant 0 : index
    %42 = vector.load %arg3[%c0_7, %c0_8] : memref<2x20xf32, #tpu.memory_space<vmem>>, vector<2x20xf32>
    %43 = tpu.transpose %41, [1, 0] : vector<8x20xf32> -> vector<20x8xf32>
    %cst_9 = arith.constant dense<0.000000e+00> : vector<2x8xf32>
    %44 = tpu.matmul %42, %43, %cst_9 {dimension_numbers = #tpu.dot_dimension_numbers<[1], [0], [0], [1], [0, 0, 1, 1], [], []>} : vector<2x20xf32>, vector<20x8xf32>, vector<2x8xf32> -> vector<2x8xf32>
    %c0_10 = arith.constant 0 : index
    %c0_11 = arith.constant 0 : index
    %45 = vector.load %arg4[%c0_10, %c0_11] : memref<2x1xf32, #tpu.memory_space<vmem>>, vector<2x1xf32>
    %46 = vector.broadcast %45 : vector<2x1xf32> to vector<2x8xf32>
    %47 = arith.addf %44, %46 : vector<2x8xf32>
    %c0_12 = arith.constant 0 : index
    %c0_13 = arith.constant 0 : index
    %48 = vector.load %arg5[%c0_12, %c0_13] : memref<2x8xf32, #tpu.memory_space<vmem>>, vector<2x8xf32>
    tpu.vector_store %arg5[%c0_12, %c0_13], %47 {strides = array<i32>} : memref<2x8xf32, #tpu.memory_space<vmem>>, vector<2x8xf32>,
    return
  }
  func.func @transform_0(%arg0: i32) -> (i32, i32, i32) {
    %c0_i32 = arith.constant 0 : i32
    %c0_i32_0 = arith.constant 0 : i32
    %c0_i32_1 = arith.constant 0 : i32
    return %arg0, %c0_i32, %c0_i32_0 : i32, i32, i32
  }
  func.func @transform_1(%arg0: i32) -> (i32, i32) {
    %c0_i32 = arith.constant 0 : i32
    %c0_i32_0 = arith.constant 0 : i32
    %c0_i32_1 = arith.constant 0 : i32
    return %c0_i32, %c0_i32_0 : i32, i32
  }
  func.func @transform_2(%arg0: i32) -> (i32, i32) {
    %c0_i32 = arith.constant 0 : i32
    %c0_i32_0 = arith.constant 0 : i32
    %c0_i32_1 = arith.constant 0 : i32
    return %c0_i32, %c0_i32_0 : i32, i32
  }
  func.func @transform_3(%arg0: i32) -> (i32, i32) {
    %c0_i32 = arith.constant 0 : i32
    %c0_i32_0 = arith.constant 0 : i32
    %c0_i32_1 = arith.constant 0 : i32
    return %c0_i32, %c0_i32_0 : i32, i32
  }
  func.func @transform_4(%arg0: i32) -> (i32, i32) {
    %c0_i32 = arith.constant 0 : i32
    %c0_i32_0 = arith.constant 0 : i32
    return %c0_i32, %arg0 : i32, i32
  }
}

</mosaic_0001>

<bundles_post_ra>
// kernel: grammarflaw_forward.1
= control target key start
LH: loop header
LB: loop body
LE: loop exit
PB: predicated region body
PF: predicated region fallthrough
CT: control target
= control target key end

     0   :  { %s1141_s23 = smov 108   ;;  %s1142_s28 = smov 88   ;;  %vm82_vm0 = vcmask 1046528   ;;  %vm267_vm1 = vcmask 1045504   ;;  %vm452_vm2 = vcmask 1044480   ;;  %vm707_vm3 = vcmask 162816   ;;  %s2259_s0 = inlined_call_operand.vmem [shape: f32[8,32,80], index: 0, kind: input, shape index: {}]   ;;  %s2260_s1 = inlined_call_operand.vmem [shape: f32[1,20], index: 1, kind: input, shape index: {}]   ;;  %s2261_s3 = inlined_call_operand.vmem [shape: f32[2,1], index: 3, kind: input, shape index: {}]   ;;  %s2262_s2 = inlined_call_operand.vmem [shape: f32[2,20], index: 2, kind: input, shape index: {}]   ;;  %s2263_s4 = inlined_call_operand.vmem [shape: f32[2,8], index: 4, kind: output, shape index: {}]  }
   0x1   :  { %v1177_v0 = vld [vmem:[%s2259_s0 + $0x20] sm:$0xff]  ;;  %s1143_s9 = smov 20   ;;  %v1274_v24 = vld [vmem:[%s2259_s0 + $0x28] sm:$0xff]  ;;  %v1279_v25 = vld [vmem:[%s2259_s0 + $0x30] sm:$0xff]  ;;  %s1144_s18 = smov 40   ;;  %vm1147_vm4 = vmmov 0  }
   0x2   :  { %v1182_v1 = vld [vmem:[%s2259_s0] sm:$0xff]  ;;  %v90_v3 = vrot.slane %v1177_v0, 1  ;;  %v275_v9 = vrot.slane %v1177_v0, 2  ;;  %2292 = vst [vmem:[#allocation2_spill] sm:$0xff] %v1279_v25  ;;  %v91_v27 = vrot.slane %v1274_v24, 1  ;;  %v93_v28 = vrot.slane %v1279_v25, 1 }
   0x3   :  { %v1187_v2 = vld [vmem:[%s2259_s0 + $0x40] sm:$0xff]  ;;  %v83_v4 = vrot.slane %v1182_v1, 1  ;;  %v268_v14 = vrot.slane %v1182_v1, 2  ;;  %v1293_v29 = vld [vmem:[%s2259_s0 + $0x48] sm:$0xff]  ;;  %v1298_v30 = vld [vmem:[%s2259_s0 + $0x50] sm:$0xff]  ;;  %v276_v50 = vrot.slane %v1274_v24, 2 }
   0x4   :  { %v1194_v5 = vld [vmem:[%s2259_s0 + $0x60] sm:$0xff]  ;;  %815 = vrot.lane.b32.xlu0 %v90_v3, %s1141_s23  ;;  %v97_v6 = vrot.slane %v1187_v2, 1  ;;  %v282_v12 = vrot.slane %v1187_v2, 2  ;;  %2293 = vst [vmem:[#allocation3_spill] sm:$0xff] %v1298_v30  ;;  %v92_v31 = vsel %vm82_vm0, %v90_v3, %v91_v27  ;;  %v94_v32 = vsel %vm82_vm0, %v91_v27, %v93_v28  ;;  %v1311_v35 = vld [vmem:[%s2259_s0 + $0x8] sm:$0xff]  ;;  %v1316_v36 = vld [vmem:[%s2259_s0 + $0x10] sm:$0xff] }
   0x5   :  { %813 = vrot.lane.b32.xlu1 %v83_v4, %s1141_s23  ;;  %v104_v7 = vrot.slane %v1194_v5, 1  ;;  %v1205_v8 = vld [vmem:[%s2259_s0 + $0x80] sm:$0xff]  ;;  %v289_v15 = vrot.slane %v1194_v5, 2  ;;  %v98_v33 = vrot.slane %v1293_v29, 1  ;;  %v100_v34 = vrot.slane %v1298_v30, 1  ;;  %v1327_v41 = vld [vmem:[%s2259_s0 + $0x68] sm:$0xff] }
   0x6   :  { %v111_v10 = vrot.slane %v1205_v8, 1  ;;  %v1216_v11 = vld [vmem:[%s2259_s0 + $0xa0] sm:$0xff]  ;;  %v296_v20 = vrot.slane %v1205_v8, 2  ;;  %v84_v39 = vrot.slane %v1311_v35, 1  ;;  %v86_v40 = vrot.slane %v1316_v36, 1  ;;  %2294 = vst [vmem:[#allocation4_spill] sm:$0xff] %v1327_v41 }
   0x7   :  { %v118_v13 = vrot.slane %v1216_v11, 1  ;;  %v1237_v16 = vld [vmem:[%s2259_s0 + $0xc0] sm:$0xff]  ;;  %v303_v22 = vrot.slane %v1216_v11, 2  ;;  %v99_v37 = vsel %vm82_vm0, %v97_v6, %v98_v33  ;;  %v101_v38 = vsel %vm82_vm0, %v98_v33, %v100_v34  ;;  %v1332_v42 = vld [vmem:[%s2259_s0 + $0x38] sm:$0xff]  ;;  %v1345_v47 = vld [vmem:[%s2259_s0 + $0x70] sm:$0xff]  ;;  %s1145_s27 = smov 68  }
   0x8   :  { %817 = vrot.lane.b32.xlu0 %v97_v6, %s1141_s23  ;;  %v125_v17 = vrot.slane %v1237_v16, 1  ;;  %v1249_v18 = vld [vmem:[%s2260_s1] ss:$0 sm:$0xff]  ;;  %v2266_v23 = vrot.slane %v1237_v16, 2  ;;  %v87_v43 = vsel %vm82_vm0, %v84_v39, %v86_v40  ;;  %v85_v44 = vsel %vm82_vm0, %v83_v4, %v84_v39  ;;  %v1358_v52 = vld [vmem:[%s2259_s0 + $0x58] sm:$0xff]  ;;  %v1371_v57 = vld [vmem:[%s2259_s0 + $0x88] sm:$0xff] }
   0x9   :  { %819 = vrot.lane.b32.xlu1 %v104_v7, %s1141_s23  ;;  %v1254_v19 = vld [vmem:[%s2259_s0 + $0xe0] sm:$0xff]  ;;  %v105_v45 = vrot.slane %v1327_v41, 1  ;;  %v95_v46 = vrot.slane %v1332_v42, 1  ;;  %v107_v51 = vrot.slane %v1345_v47, 1  ;;  %v277_v53 = vsel %vm267_vm1, %v275_v9, %v276_v50  ;;  %2295 = vst [vmem:[#allocation5_spill] sm:$0xff] %v1371_v57  ;;  %v1376_v58 = vld [vmem:[%s2259_s0 + $0x90] sm:$0xff] }
   0xa   :  { %v132_v21 = vrot.slane %v1254_v19, 1  ;;  %v2264_v26 = vrot.slane %v1254_v19, 2  ;;  %v102_v55 = vrot.slane %v1358_v52, 1  ;;  %v278_v56 = vrot.slane %v1279_v25, 2 }
   0xb   :  { %v106_v48 = vsel %vm82_vm0, %v104_v7, %v105_v45  ;;  %v96_v49 = vsel %vm82_vm0, %v93_v28, %v95_v46  ;;  %v108_v54 = vsel %vm82_vm0, %v105_v45, %v107_v51  ;;  %v112_v61 = vrot.slane %v1371_v57, 1  ;;  %v1397_v7 = vld [vmem:[%s2259_s0 + $0x18] sm:$0xff]  ;;  %v1411_v28 = vld [vmem:[%s2259_s0 + $0xa8] sm:$0xff] }
   0xc   :  { %866 = vrot.lane.b32.xlu0 %v275_v9, %s1142_s28  ;;  %v103_v59 = vsel %vm82_vm0, %v100_v34, %v102_v55  ;;  %v279_v60 = vsel %vm267_vm1, %v276_v50, %v278_v56  ;;  %v114_v62 = vrot.slane %v1376_v58, 1  ;;  %v283_v4 = vrot.slane %v1293_v29, 2  ;;  %v1428_v34 = vld [vmem:[%s2259_s0 + $0xb0] sm:$0xff] }
   0xd   :  { %821 = vrot.lane.b32.xlu1 %v111_v10, %s1141_s23  ;;  %v113_v3 = vsel %vm82_vm0, %v111_v10, %v112_v61  ;;  %v285_v6 = vrot.slane %v1298_v30, 2  ;;  %v88_v27 = vrot.slane %v1397_v7, 1  ;;  %v269_v39 = vrot.slane %v1311_v35, 2 }
   0xe   :  { %v115_v63 = vsel %vm82_vm0, %v112_v61, %v114_v62  ;;  %v284_v10 = vsel %vm267_vm1, %v282_v12, %v283_v4  ;;  %v271_v45 = vrot.slane %v1316_v36, 2  ;;  %v461_v50 = vrot.slane %v1274_v24, 3 }
   0xf   :  { %v286_v9 = vsel %vm267_vm1, %v283_v4, %v285_v6  ;;  %vm713_vm5 = vcmask 156672   ;;  %vm1011_vm6 = vcmask 1041409   ;;  %vm1014_vm7 = vcmask 1042434  }
  0x10   :  { %868 = vrot.lane.b32.xlu0 %v282_v12, %s1142_s28  ;;  %v89_v12 = vsel %vm82_vm0, %v86_v40, %v88_v27  ;;  %v121_v40 = vrot.slane %v1428_v34, 1  ;;  %vm1017_vm8 = vcmask 1043459   ;;  %vm1020_vm9 = vcmask 1044484  }
  0x11   :  { %823 = vrot.lane.b32.xlu1 %v118_v13, %s1141_s23  ;;  %vm1023_vm10 = vcmask 1045509   ;;  %vm1026_vm11 = vcmask 1046534   ;;  %vm1029_vm12 = vcmask 1047559   ;;  %vm1106_vm13 = vcmask 58368  }
  0x14   :  { %864 = vrot.lane.b32.xlu0 %v268_v14, %s1142_s28 }
  0x15   :  { %870 = vrot.lane.b32.xlu1 %v289_v15, %s1142_s28 }
  0x18   :  { %896 = vrot.lane.b32.xlu0 %v1249_v18, %s1143_s9 }
  0x19   :  { %825 = vrot.lane.b32.xlu1 %v125_v17, %s1141_s23 }
  0x1c   :  { %872 = vrot.lane.b32.xlu0 %v296_v20, %s1142_s28 }
  0x1d   :  { %827 = vrot.lane.b32.xlu1 %v132_v21, %s1141_s23 }
  0x20   :  { %874 = vrot.lane.b32.xlu0 %v303_v22, %s1142_s28 }
  0x21   :  { %876 = vrot.lane.b32.xlu1 %v2266_v23, %s1142_s28 }
  0x24   :  { %878 = vrot.lane.b32.xlu0 %v2264_v26, %s1142_s28 }
  0x25   :  { %845 = vrot.lane.b32.xlu1 %v1249_v18, %s1144_s18 }
  0x28   :  { %147 = vrot.lane.b32.xlu0 %v92_v31, %s1141_s23  ;;  %v1416_v31 = vld [vmem:[%s2259_s0 + $0x78] sm:$0xff] }
  0x29   :  { %149 = vrot.lane.b32.xlu1 %v94_v32, %s1141_s23  ;;  %v119_v32 = vrot.slane %v1411_v28, 1  ;;  %v109_v33 = vrot.slane %v1416_v31, 1 }
  0x2c   :  { %155 = vrot.lane.b32.xlu0 %v99_v37, %s1141_s23  ;;  %v120_v37 = vsel %vm82_vm0, %v118_v13, %v119_v32  ;;  %v122_v13 = vsel %vm82_vm0, %v119_v32, %v121_v40 }
  0x2d   :  { %157 = vrot.lane.b32.xlu1 %v101_v38, %s1141_s23  ;;  %v110_v38 = vsel %vm82_vm0, %v107_v51, %v109_v33 }
  0x30   :  { %139 = vrot.lane.b32.xlu0 %v85_v44, %s1141_s23  ;;  %v280_v44 = vrot.slane %v1332_v42, 2 }
  0x31   :  { %141 = vrot.lane.b32.xlu1 %v87_v43, %s1141_s23  ;;  %v270_v43 = vsel %vm267_vm1, %v268_v14, %v269_v39  ;;  %v272_v14 = vsel %vm267_vm1, %v269_v39, %v271_v45  ;;  %v468_v39 = vrot.slane %v1293_v29, 3 }
  0x34   :  { %151 = vrot.lane.b32.xlu0 %v96_v49, %s1141_s23  ;;  %v292_v49 = vrot.slane %v1345_v47, 2 }
  0x35   :  { %163 = vrot.lane.b32.xlu1 %v106_v48, %s1141_s23  ;;  %v290_v48 = vrot.slane %v1327_v41, 2 }
  0x37   :  { %v293_v51 = vsel %vm267_vm1, %v290_v48, %v292_v49 }
  0x38   :  { %165 = vrot.lane.b32.xlu0 %v108_v54, %s1141_s23  ;;  %v463_v54 = vrot.slane %v1279_v25, 3  ;;  %v2287_v25 = vrot.slane %v1376_v58, 3 }
  0x39   :  { %332 = vrot.lane.b32.xlu1 %v277_v53, %s1142_s28  ;;  %v291_v53 = vsel %vm267_vm1, %v289_v15, %v290_v48 }
  0x3c   :  { %334 = vrot.lane.b32.xlu0 %v279_v60, %s1142_s28  ;;  %v464_v60 = vsel %vm452_vm2, %v461_v50, %v463_v54 }
  0x3d   :  { %159 = vrot.lane.b32.xlu1 %v103_v59, %s1141_s23  ;;  %v1474_v59 = vld [vmem:[%s2259_s0 + $0x98] sm:$0xff] }
  0x3e   :  { %v2273_v61 = vrot.slane %v1474_v59, 1 }
  0x40   :  { %171 = vrot.lane.b32.xlu0 %v113_v3, %s1141_s23  ;;  %v1491_v3 = vld [vmem:[%s2259_s0 + $0xd0] sm:$0xff]  ;;  %v117_v4 = vsel %vm82_vm0, %v114_v62, %v2273_v61  ;;  %v297_v62 = vrot.slane %v1371_v57, 2 }
  0x41   :  { %173 = vrot.lane.b32.xlu1 %v115_v63, %s1141_s23  ;;  %v1486_v63 = vld [vmem:[%s2259_s0 + $0xc8] sm:$0xff] }
  0x44   :  { %340 = vrot.lane.b32.xlu0 %v284_v10, %s1142_s28  ;;  %v2274_v10 = vrot.slane %v1491_v3, 1 }
  0x45   :  { %342 = vrot.lane.b32.xlu1 %v286_v9, %s1142_s28  ;;  %v126_v9 = vrot.slane %v1486_v63, 1 }
  0x47   :  { %v127_v32 = vsel %vm82_vm0, %v125_v17, %v126_v9 }
  0x48   :  { %143 = vrot.lane.b32.xlu0 %v89_v12, %s1141_s23  ;;  %v129_v12 = vsel %vm82_vm0, %v126_v9, %v2274_v10  ;;  %v474_v10 = vrot.slane %v1194_v5, 3 }
  0x49   :  { %153 = vrot.lane.b32.xlu1 %v95_v46, %s1141_s23  ;;  %v281_v46 = vsel %vm267_vm1, %v278_v56, %v280_v44  ;;  %v460_v56 = vrot.slane %v1177_v0, 3 }
  0x4b   :  { %v462_v15 = vsel %vm452_vm2, %v460_v56, %v461_v50 }
  0x4c   :  { %167 = vrot.lane.b32.xlu0 %v110_v38, %s1141_s23  ;;  %v467_v38 = vrot.slane %v1187_v2, 3 }
  0x4d   :  { %179 = vrot.lane.b32.xlu1 %v120_v37, %s1141_s23  ;;  %v2267_v37 = vrot.slane %v1358_v52, 2 }
  0x4f   :  { %v288_v17 = vsel %vm267_vm1, %v285_v6, %v2267_v37 }
  0x50   :  { %181 = vrot.lane.b32.xlu0 %v122_v13, %s1141_s23  ;;  %v469_v13 = vsel %vm452_vm2, %v467_v38, %v468_v39 }
  0x51   :  { %324 = vrot.lane.b32.xlu1 %v270_v43, %s1142_s28  ;;  %v2272_v43 = vrot.slane %v1376_v58, 2 }
  0x54   :  { %326 = vrot.lane.b32.xlu0 %v272_v14, %s1142_s28 }
  0x55   :  { %336 = vrot.lane.b32.xlu1 %v281_v46, %s1142_s28  ;;  %v2265_v46 = vrot.slane %v1298_v30, 3 }
  0x57   :  { %v471_v6 = vsel %vm452_vm2, %v468_v39, %v2265_v46 }
  0x58   :  { %348 = vrot.lane.b32.xlu0 %v291_v53, %s1142_s28 }
  0x59   :  { %350 = vrot.lane.b32.xlu1 %v293_v51, %s1142_s28 }
  0x5c   :  { %517 = vrot.lane.b32.xlu0 %v462_v15, %s1145_s27 }
  0x5d   :  { %519 = vrot.lane.b32.xlu1 %v464_v60, %s1145_s27 }
  0x60   :  { %161 = vrot.lane.b32.xlu0 %v102_v55, %s1141_s23  ;;  %v298_v55 = vsel %vm267_vm1, %v296_v20, %v297_v62  ;;  %v300_v20 = vsel %vm267_vm1, %v297_v62, %v2272_v43 }
  0x61   :  { %175 = vrot.lane.b32.xlu1 %v117_v4, %s1141_s23 }
  0x64   :  { %187 = vrot.lane.b32.xlu0 %v127_v32, %s1141_s23 }
  0x65   :  { %189 = vrot.lane.b32.xlu1 %v129_v12, %s1141_s23 }
  0x68   :  { %344 = vrot.lane.b32.xlu0 %v288_v17, %s1142_s28 }
  0x69   :  { %356 = vrot.lane.b32.xlu1 %v298_v55, %s1142_s28 }
  0x6c   :  { %358 = vrot.lane.b32.xlu0 %v300_v20, %s1142_s28 }
  0x6d   :  { %525 = vrot.lane.b32.xlu1 %v469_v13, %s1145_s27 }
  0x70   :  { %527 = vrot.lane.b32.xlu0 %v471_v6, %s1145_s27 }
  0x71   :  { %145 = vrot.lane.b32.xlu1 %v88_v27, %s1141_s23 }
  0x76   :  { %v816_v14 = vpop.permute.xlu0 %815 }
  0x77   :  { %v814_v48 = vpop.permute.xlu1 %813  ;;  %v1542_v12 = vadd.f32 %v816_v14, %v1177_v0 }
  0x78   :  { %v1548_v62 = vadd.f32 %v814_v48, %v1182_v1 }
  0x7a   :  { %v818_v50 = vpop.permute.xlu0 %817 }
  0x7b   :  { %v820_v51 = vpop.permute.xlu1 %819  ;;  %v1545_v32 = vadd.f32 %v818_v50, %v1187_v2 }
  0x7c   :  { %v1551_v27 = vadd.f32 %v820_v51, %v1194_v5  ;;  %v1692_v5 = vld [vmem:[%s2259_s0 + $0xd8] sm:$0xff] }
  0x7e   :  { %v867_v53 = vpop.permute.xlu0 %866 }
  0x7f   :  { %v822_v56 = vpop.permute.xlu1 %821  ;;  %v889_v38 = vadd.f32 %v867_v53, %v1542_v12 }
  0x80   :  { %v1558_v50 = vadd.f32 %v822_v56, %v1205_v8 }
  0x82   :  { %v869_v60 = vpop.permute.xlu0 %868 }
  0x83   :  { %v824_v15 = vpop.permute.xlu1 %823  ;;  %v890_v55 = vadd.f32 %v869_v60, %v1545_v32 }
  0x84   :  { %v1564_v60 = vadd.f32 %v824_v15, %v1216_v11 }
  0x86   :  { %v865_v4 = vpop.permute.xlu0 %864 }
  0x87   :  { %v871_v9 = vpop.permute.xlu1 %870  ;;  %v888_v13 = vadd.f32 %v865_v4, %v1548_v62 }
  0x88   :  { %v891_v20 = vadd.f32 %v871_v9, %v1551_v27 }
  0x8a   :  { %v897_v17 = vpop.permute.xlu0 %896 }
  0x8b   :  { %v826_v39 = vpop.permute.xlu1 %825  ;;  %v901_v6 = vadd.f32 %v897_v17, %v890_v55  ;;  %v900_v14 = vadd.f32 %v897_v17, %v889_v38  ;;  %v902_v46 = vadd.f32 %v897_v17, %v891_v20  ;;  %v899_v51 = vadd.f32 %v897_v17, %v888_v13 }
  0x8c   :  { %v1567_v4 = vadd.f32 %v826_v39, %v1237_v16 }
  0x8d   :  { %v909_v48 = vmax.f32 %v901_v6, 0.0  ;;  %v908_v26 = vmax.f32 %v900_v14, 0.0  ;;  %v910_v9 = vmax.f32 %v902_v46, 0.0  ;;  %v907_v38 = vmax.f32 %v899_v51, 0.0 }
  0x8e   :  { %v873_v23 = vpop.permute.xlu0 %872 }
  0x8f   :  { %v828_v37 = vpop.permute.xlu1 %827  ;;  %v892_v53 = vadd.f32 %v873_v23, %v1558_v50  ;;  %927 = vrot.lane.b32.xlu1 %v909_v48, %s1143_s9  ;;  %925 = vrot.lane.b32.xlu0 %v908_v26, %s1143_s9 }
  0x90   :  { %v1574_v23 = vadd.f32 %v828_v37, %v1254_v19 }
  0x91   :  { %v903_v56 = vadd.f32 %v897_v17, %v892_v53  ;;  %v1583_v53 = vld [vmem:[%s2259_s0 + $0xb8] sm:$0xff] }
  0x92   :  { %v875_v55 = vpop.permute.xlu0 %874 }
  0x93   :  { %v877_v20 = vpop.permute.xlu1 %876  ;;  %v893_v13 = vadd.f32 %v875_v55, %v1564_v60  ;;  %929 = vrot.lane.b32.xlu1 %v910_v9, %s1143_s9  ;;  %923 = vrot.lane.b32.xlu0 %v907_v38, %s1143_s9  ;;  %v911_v39 = vmax.f32 %v903_v56, 0.0  ;;  %v1589_v56 = vld [vmem:[%s2259_s0 + $0xe8] sm:$0xff] }
  0x94   :  { %v894_v6 = vadd.f32 %v877_v20, %v1567_v4  ;;  %v2268_v20 = vrot.slane %v1583_v53, 1 }
  0x95   :  { %v904_v26 = vadd.f32 %v897_v17, %v893_v13 }
  0x96   :  { %v905_v15 = vadd.f32 %v897_v17, %v894_v6  ;;  %v879_v14 = vpop.permute.xlu0 %878  ;;  %v133_v6 = vrot.slane %v1589_v56, 1 }
  0x97   :  { %v1576_v48 = vpop.permute.xlu1 %845  ;;  %v895_v46 = vadd.f32 %v879_v14, %v1574_v23  ;;  %931 = vrot.lane.b32.xlu0 %v911_v39, %s1143_s9  ;;  %v912_v51 = vmax.f32 %v904_v26, 0.0  ;;  %v124_v39 = vsel %vm82_vm0, %v121_v40, %v2268_v20  ;;  %v304_v20 = vrot.slane %v1411_v28, 2 }
  0x98   :  { %v913_v37 = vmax.f32 %v905_v15, 0.0 }
  0x99   :  { %v906_v9 = vadd.f32 %v897_v17, %v895_v46  ;;  %933 = vrot.lane.b32.xlu1 %v912_v51, %s1143_s9  ;;  %v1600_v17 = vld [vmem:[%s2259_s0 + $0xf0] sm:$0xff]  ;;  %v134_v46 = vsel %vm82_vm0, %v132_v21, %v133_v6  ;;  %v2269_v51 = vrot.slane %v1397_v7, 2 }
  0x9a   :  { %v1591_v38 = vpop.permute.xlu0 %147  ;;  %v2270_v14 = vrot.slane %v1600_v17, 1 }
  0x9b   :  { %v1593_v55 = vpop.permute.xlu1 %149  ;;  %935 = vrot.lane.b32.xlu0 %v913_v37, %s1143_s9  ;;  %v914_v13 = vmax.f32 %v906_v9, 0.0  ;;  %v274_v21 = vsel %vm267_vm1, %v271_v45, %v2269_v51  ;;  %v2275_v45 = vrot.slane %v1428_v34, 2  ;;  %v453_v51 = vrot.slane %v1182_v1, 3 }
  0x9c   :  { %v136_v40 = vsel %vm82_vm0, %v133_v6, %v2270_v14  ;;  %v454_v14 = vrot.slane %v1311_v35, 3 }
  0x9d   :  { %937 = vrot.lane.b32.xlu1 %v914_v13, %s1143_s9 }
  0x9e   :  { %v1604_v26 = vpop.permute.xlu0 %155  ;;  %v455_v61 = vsel %vm452_vm2, %v453_v51, %v454_v14 }
  0x9f   :  { %v1606_v15 = vpop.permute.xlu1 %157  ;;  %169 = vrot.lane.b32.xlu0 %v109_v33, %s1141_s23  ;;  %v2271_v33 = vrot.slane %v1416_v31, 2 }
  0xa1   :  { %183 = vrot.lane.b32.xlu1 %v124_v39, %s1141_s23  ;;  %v295_v6 = vsel %vm267_vm1, %v292_v49, %v2271_v33  ;;  %v307_v49 = vsel %vm267_vm1, %v304_v20, %v2275_v45 }
  0xa2   :  { %v1624_v37 = vpop.permute.xlu0 %139 }
  0xa3   :  { %v1622_v9 = vpop.permute.xlu1 %141  ;;  %195 = vrot.lane.b32.xlu0 %v134_v46, %s1141_s23 }
  0xa5   :  { %197 = vrot.lane.b32.xlu1 %v136_v40, %s1141_s23 }
  0xa6   :  { %v1639_v39 = vpop.permute.xlu0 %151 }
  0xa7   :  { %v1637_v13 = vpop.permute.xlu1 %163  ;;  %2297 = vst [vmem:[#allocation7_spill] sm:$0xff] %v1639_v39  ;;  %328 = vrot.lane.b32.xlu0 %v274_v21, %s1142_s28  ;;  %v305_v21 = vsel %vm267_vm1, %v303_v22, %v304_v20  ;;  %v2277_v22 = vrot.slane %v1332_v42, 3  ;;  %v475_v20 = vrot.slane %v1327_v41, 3  ;;  %v2284_v41 = vrot.slane %v1358_v52, 3 }
  0xa8   :  { %2296 = vst [vmem:[#allocation6_spill] sm:$0xff] %v1637_v13 }
  0xa9   :  { %338 = vrot.lane.b32.xlu1 %v280_v44, %s1142_s28  ;;  %v2276_v44 = vrot.slane %v1316_v36, 3  ;;  %v466_v51 = vsel %vm452_vm2, %v463_v54, %v2277_v22  ;;  %v2279_v22 = vrot.slane %v1692_v5, 1 }
  0xaa   :  { %v1654_v40 = vpop.permute.xlu0 %165 }
  0xab   :  { %v1652_v46 = vpop.permute.xlu1 %332  ;;  %2298 = vst [vmem:[#allocation8_spill] sm:$0xff] %v1654_v40  ;;  %352 = vrot.lane.b32.xlu0 %v295_v6, %s1142_s28  ;;  %v457_v6 = vsel %vm452_vm2, %v454_v14, %v2276_v44  ;;  %v2305_v40 = vrot.slane %v1358_v52, 2 }
  0xad   :  { %364 = vrot.lane.b32.xlu1 %v305_v21, %s1142_s28 }
  0xae   :  { %v335_v43 = vpop.permute.xlu0 %334 }
  0xaf   :  { %v1667_v33 = vpop.permute.xlu1 %159  ;;  %366 = vrot.lane.b32.xlu0 %v307_v49, %s1142_s28  ;;  %v2278_v49 = vrot.slane %v1345_v47, 3 }
  0xb0   :  { %2299 = vst [vmem:[#allocation9_spill] sm:$0xff] %v1667_v33  ;;  %v2304_v33 = vrot.slane %v1376_v58, 2 }
  0xb1   :  { %509 = vrot.lane.b32.xlu1 %v455_v61, %s1145_s27  ;;  %v476_v61 = vsel %vm452_vm2, %v474_v10, %v475_v20  ;;  %v478_v54 = vsel %vm452_vm2, %v475_v20, %v2278_v49  ;;  %v2302_v10 = vrot.slane %v1491_v3, 1  ;;  %v2303_v20 = vrot.slane %v1474_v59, 1 }
  0xb2   :  { %v1680_v45 = vpop.permute.xlu0 %171 }
  0xb3   :  { %v1678_v21 = vpop.permute.xlu1 %173  ;;  %2301 = vst [vmem:[#allocation11_spill] sm:$0xff] %v1680_v45  ;;  %511 = vrot.lane.b32.xlu0 %v457_v6, %s1145_s27  ;;  %v2281_v45 = vrot.slane %v1474_v59, 2 }
  0xb4   :  { %2300 = vst [vmem:[#allocation10_spill] sm:$0xff] %v1678_v21 }
  0xb5   :  { %521 = vrot.lane.b32.xlu1 %v466_v51, %s1145_s27  ;;  %v131_v51 = vsel %vm82_vm0, %v2302_v10, %v2279_v22  ;;  %v302_v10 = vsel %vm267_vm1, %v2304_v33, %v2281_v45  ;;  %v2283_v22 = vrot.slane %v1491_v3, 2  ;;  %v481_v45 = vrot.slane %v1205_v8, 3 }
  0xb6   :  { %v1698_v44 = vpop.permute.xlu0 %340 }
  0xb7   :  { %v1696_v14 = vpop.permute.xlu1 %342  ;;  %533 = vrot.lane.b32.xlu0 %v476_v61, %s1145_s27  ;;  %v311_v61 = vrot.slane %v1486_v63, 2 }
  0xb9   :  { %535 = vrot.lane.b32.xlu1 %v478_v54, %s1145_s27  ;;  %v314_v33 = vsel %vm267_vm1, %v311_v61, %v2283_v22 }
  0xba   :  { %v1708_v21 = vpop.permute.xlu0 %143 }
  0xbb   :  { %v1706_v6 = vpop.permute.xlu1 %153  ;;  %177 = vrot.lane.b32.xlu0 %v2303_v20, %s1141_s23  ;;  %v2306_v20 = vrot.slane %v1237_v16, 2 }
  0xbd   :  { %191 = vrot.lane.b32.xlu1 %v131_v51, %s1141_s23  ;;  %v312_v51 = vsel %vm267_vm1, %v2306_v20, %v311_v61  ;;  %v2307_v20 = vrot.slane %v1298_v30, 3  ;;  %v1759_v61 = vld [vmem:[%s2259_s0 + $0xf8] sm:$0xff] }
  0xbe   :  { %v1723_v49 = vpop.permute.xlu0 %167 }
  0xbf   :  { %v1721_v54 = vpop.permute.xlu1 %179  ;;  %346 = vrot.lane.b32.xlu0 %v2305_v40, %s1142_s28  ;;  %v482_v40 = vrot.slane %v1371_v57, 3  ;;  %v240_v57 = vadd.f32 %v1593_v55, %v1274_v24  ;;  %v2312_v24 = vrot.slane %v1583_v53, 1 }
  0xc1   :  { %360 = vrot.lane.b32.xlu1 %v302_v10, %s1142_s28  ;;  %v473_v10 = vsel %vm452_vm2, %v2307_v20, %v2284_v41  ;;  %v485_v20 = vsel %vm452_vm2, %v482_v40, %v2287_v25  ;;  %v2288_v41 = vrot.slane %v1759_v61, 1 }
  0xc2   :  { %v1741_v39 = vpop.permute.xlu0 %181 }
  0xc3   :  { %v1739_v13 = vpop.permute.xlu1 %324  ;;  %372 = vrot.lane.b32.xlu0 %v312_v51, %s1142_s28  ;;  %v483_v51 = vsel %vm452_vm2, %v481_v45, %v482_v40  ;;  %v2311_v45 = vrot.slane %v1600_v17, 1 }
  0xc5   :  { %374 = vrot.lane.b32.xlu1 %v314_v33, %s1142_s28  ;;  %v239_v33 = vadd.f32 %v1591_v38, %v1177_v0  ;;  %v138_v40 = vsel %vm82_vm0, %v2311_v45, %v2288_v41  ;;  %v425_v0 = vadd.f32 %v335_v43, %v240_v57  ;;  %v2313_v57 = vrot.slane %v1397_v7, 2 }
  0xc6   :  { %v1763_v22 = vpop.permute.xlu0 %326 }
  0xc7   :  { %v1761_v8 = vpop.permute.xlu1 %336  ;;  %529 = vrot.lane.b32.xlu0 %v473_v10, %s1145_s27  ;;  %v424_v10 = vadd.f32 %v1652_v46, %v239_v33  ;;  %v2314_v33 = vrot.slane %v1428_v34, 2 }
  0xc8   :  { %2308 = vst [vmem:[#allocation12_spill] sm:$0xff] %v1761_v8 }
  0xc9   :  { %541 = vrot.lane.b32.xlu1 %v483_v51, %s1145_s27  ;;  %v2289_v51 = vrot.slane %v1583_v53, 2 }
  0xca   :  { %v1778_v8 = vpop.permute.xlu0 %348 }
  0xcb   :  { %v1776_v30 = vpop.permute.xlu1 %350  ;;  %2310 = vst [vmem:[#allocation14_spill] sm:$0xff] %v1778_v8  ;;  %543 = vrot.lane.b32.xlu0 %v485_v20, %s1145_s27  ;;  %v318_v20 = vrot.slane %v1589_v56, 2 }
  0xcc   :  { %2309 = vst [vmem:[#allocation13_spill] sm:$0xff] %v1776_v30 }
  0xcd   :  { %185 = vrot.lane.b32.xlu1 %v2312_v24, %s1141_s23  ;;  %v2316_v24 = vrot.slane %v1254_v19, 2 }
  0xce   :  { %v518_v55 = vpop.permute.xlu0 %517 }
  0xcf   :  { %v520_v38 = vpop.permute.xlu1 %519  ;;  %v609_v30 = vadd.f32 %v518_v55, %v424_v10  ;;  %199 = vrot.lane.b32.xlu0 %v138_v40, %s1141_s23  ;;  %v309_v40 = vsel %vm267_vm1, %v2314_v33, %v2289_v51  ;;  %v2290_v10 = vrot.slane %v1600_v17, 2  ;;  %v2291_v55 = vrot.slane %v1397_v7, 3 }
  0xd0   :  { %v610_v25 = vadd.f32 %v520_v38, %v425_v0  ;;  %v319_v38 = vsel %vm267_vm1, %v2316_v24, %v318_v20  ;;  %v243_v24 = vadd.f32 %v1604_v26, %v1187_v2  ;;  %v244_v2 = vadd.f32 %v1606_v15, %v1293_v29 }
  0xd1   :  { %v647_v45 = vadd.f32 %v1249_v18, %v609_v30  ;;  %330 = vrot.lane.b32.xlu1 %v2313_v57, %s1142_s28  ;;  %v2315_v30 = vrot.slane %v1416_v31, 2 }
  0xd2   :  { %v648_v8 = vadd.f32 %v1249_v18, %v610_v25  ;;  %v1800_v46 = vpop.permute.xlu0 %161  ;;  %v428_v26 = vadd.f32 %v1698_v44, %v243_v24  ;;  %v315_v44 = vrot.slane %v1692_v5, 2 }
  0xd3   :  { %v1798_v43 = vpop.permute.xlu1 %175  ;;  %v679_v0 = vmax.f32 %v647_v45, 0.0  ;;  %354 = vrot.lane.b32.xlu0 %v2315_v30, %s1142_s28  ;;  %v321_v30 = vsel %vm267_vm1, %v318_v20, %v2290_v10  ;;  %v488_v20 = vrot.slane %v1216_v11, 3  ;;  %v2320_v10 = vrot.slane %v1345_v47, 3 }
  0xd4   :  { %v680_v25 = vmax.f32 %v648_v8, 0.0 }
  0xd5   :  { %v1819_v41 = vsel %vm707_vm3, %v679_v0, -inf  ;;  %368 = vrot.lane.b32.xlu1 %v309_v40, %s1142_s28  ;;  %v479_v40 = vrot.slane %v1416_v31, 3  ;;  %v491_v31 = vrot.slane %v1428_v34, 3  ;;  %v429_v34 = vadd.f32 %v1696_v14, %v244_v2 }
  0xd6   :  { %v1816_v57 = vsel %vm707_vm3, %v680_v25, -inf  ;;  %v1826_v33 = vpop.permute.xlu0 %187  ;;  %v2317_v25 = vrot.slane %v1316_v36, 3  ;;  %v2324_v2 = vrot.slane %v1474_v59, 2 }
  0xd7   :  { %v1824_v45 = vpop.permute.xlu1 %189  ;;  %380 = vrot.lane.b32.xlu0 %v319_v38, %s1142_s28  ;;  %v489_v38 = vrot.slane %v1411_v28, 3 }
  0xd8   :  { %v459_v0 = vsel %vm452_vm2, %v2317_v25, %v2291_v55  ;;  %v480_v25 = vsel %vm452_vm2, %v2320_v10, %v479_v40 }
  0xd9   :  { %382 = vrot.lane.b32.xlu1 %v321_v30, %s1142_s28  ;;  %v2321_v30 = vrot.slane %v1332_v42, 3  ;;  %v492_v10 = vsel %vm452_vm2, %v489_v38, %v491_v31 }
  0xda   :  { %v1843_v51 = vpop.permute.xlu0 %344 }
  0xdb   :  { %v1841_v8 = vpop.permute.xlu1 %356  ;;  %2319 = vst [vmem:[#allocation16_spill] sm:$0xff] %v1843_v51  ;;  %513 = vrot.lane.b32.xlu0 %v459_v0, %s1145_s27  ;;  %v490_v0 = vsel %vm452_vm2, %v488_v20, %v489_v38  ;;  %v2323_v38 = vrot.slane %v1491_v3, 2 }
  0xdc   :  { %2318 = vst [vmem:[#allocation15_spill] sm:$0xff] %v1841_v8 }
  0xdd   :  { %523 = vrot.lane.b32.xlu1 %v2321_v30, %s1145_s27  ;;  %v316_v14 = vsel %vm267_vm1, %v2323_v38, %v315_v44  ;;  %v2327_v38 = vrot.slane %v1759_v61, 1 }
  0xde   :  { %v1858_v8 = vpop.permute.xlu0 %358 }
  0xdf   :  { %v526_v55 = vpop.permute.xlu1 %525  ;;  %537 = vrot.lane.b32.xlu0 %v480_v25, %s1145_s27 }
  0xe0   :  { %v613_v51 = vadd.f32 %v526_v55, %v428_v26  ;;  %v2322_v55 = vrot.slane %v1692_v5, 1  ;;  %v495_v26 = vrot.slane %v1237_v16, 3  ;;  %v2326_v16 = vrot.slane %v1358_v52, 3 }
  0xe1   :  { %549 = vrot.lane.b32.xlu1 %v490_v0, %s1145_s27  ;;  %v496_v0 = vrot.slane %v1486_v63, 3 }
  0xe2   :  { %v651_v29 = vadd.f32 %v1249_v18, %v613_v51  ;;  %v528_v15 = vpop.permute.xlu0 %527  ;;  %v486_v51 = vrot.slane %v1474_v59, 3 }
  0xe3   :  { %v614_v24 = vadd.f32 %v528_v15, %v429_v34  ;;  %551 = vrot.lane.b32.xlu0 %v492_v10, %s1145_s27  ;;  %v2325_v15 = vrot.slane %v1376_v58, 3 }
  0xe4   :  { %v683_v30 = vmax.f32 %v651_v29, 0.0 }
  0xe5   :  { %v652_v20 = vadd.f32 %v1249_v18, %v614_v24  ;;  %193 = vrot.lane.b32.xlu1 %v2322_v55, %s1141_s23  ;;  %v487_v59 = vsel %vm452_vm2, %v2325_v15, %v486_v51  ;;  %v498_v24 = vrot.slane %v1491_v3, 3  ;;  %v322_v55 = vrot.slane %v1759_v61, 2 }
  0xe6   :  { %v1882_v10 = vsel %vm707_vm3, %v683_v30, -inf  ;;  %v497_v30 = vsel %vm452_vm2, %v495_v26, %v496_v0  ;;  %v2328_v3 = vrot.slane %v1600_v17, 2  ;;  %v502_v26 = vrot.slane %v1254_v19, 3 }
  0xe7   :  { %v684_v25 = vmax.f32 %v652_v20, 0.0  ;;  %362 = vrot.lane.b32.xlu0 %v2324_v2, %s1142_s28  ;;  %v499_v20 = vsel %vm452_vm2, %v496_v0, %v498_v24  ;;  %v493_v2 = vrot.slane %v1583_v53, 3  ;;  %v503_v0 = vrot.slane %v1589_v56, 3 }
  0xe8   :  { %v2330_v15 = vrot.slane %v1397_v7, 3 }
  0xe9   :  { %v1885_v34 = vsel %vm707_vm3, %v684_v25, -inf  ;;  %376 = vrot.lane.b32.xlu1 %v316_v14, %s1142_s28  ;;  %v323_v14 = vsel %vm267_vm1, %v2328_v3, %v322_v55  ;;  %v2329_v25 = vrot.slane %v1583_v53, 2 }
  0xea   :  { %v737_v29 = vmax.f32 %v1882_v10, %v1885_v34 }
  0xeb   :  { %531 = vrot.lane.b32.xlu0 %v2326_v16, %s1145_s27  ;;  %v505_v16 = vrot.slane %v1600_v17, 3 }
  0xed   :  { %545 = vrot.lane.b32.xlu1 %v487_v59, %s1145_s27  ;;  %v494_v59 = vsel %vm452_vm2, %v491_v31, %v493_v2  ;;  %v506_v19 = vsel %vm452_vm2, %v503_v0, %v505_v16 }
  0xef   :  { %557 = vrot.lane.b32.xlu0 %v497_v30, %s1145_s27  ;;  %v1922_v30 = vpop.permute.xlu1 %145 }
  0xf1   :  { %559 = vrot.lane.b32.xlu1 %v499_v20, %s1145_s27  ;;  %v504_v20 = vsel %vm452_vm2, %v502_v26, %v503_v0 }
  0xf3   :  { %201 = vrot.lane.b32.xlu0 %v2327_v38, %s1141_s23  ;;  %v500_v38 = vrot.slane %v1692_v5, 3 }
  0xf5   :  { %370 = vrot.lane.b32.xlu1 %v2329_v25, %s1142_s28 }
  0xf7   :  { %384 = vrot.lane.b32.xlu0 %v323_v14, %s1142_s28  ;;  %v507_v14 = vrot.slane %v1759_v61, 3 }
  0xf9   :  { %515 = vrot.lane.b32.xlu1 %v2330_v15, %s1145_s27  ;;  %v508_v0 = vsel %vm452_vm2, %v505_v16, %v507_v14  ;;  %v849_v15 = vadd.f32 %v1576_v48, %v1542_v12  ;;  %v851_v12 = vadd.f32 %v1576_v48, %v1551_v27 }
  0xfb   :  { %539 = vrot.lane.b32.xlu0 %v479_v40, %s1145_s27  ;;  %v501_v40 = vsel %vm452_vm2, %v498_v24, %v500_v38  ;;  %v857_v24 = vmax.f32 %v849_v15, 0.0 }
  0xfd   :  { %553 = vrot.lane.b32.xlu1 %v494_v59, %s1145_s27 }
  0xff   :  { %565 = vrot.lane.b32.xlu0 %v504_v20, %s1145_s27  ;;  %v848_v20 = vadd.f32 %v1576_v48, %v1548_v62  ;;  %v859_v62 = vmax.f32 %v851_v12, 0.0 }
 0x101   :  { %567 = vrot.lane.b32.xlu1 %v506_v19, %s1145_s27  ;;  %v928_v7 = vpop.permute.xlu1 %927  ;;  %v926_v31 = vpop.permute.xlu0 %925 }
 0x102   :  { %v948_v19 = vmax.f32 %v857_v24, %v926_v31  ;;  %v853_v31 = vadd.f32 %v1576_v48, %v1564_v60  ;;  %v855_v60 = vadd.f32 %v1576_v48, %v1574_v23 }
 0x103   :  { %378 = vrot.lane.b32.xlu0 %v315_v44, %s1142_s28  ;;  %v850_v44 = vadd.f32 %v1576_v48, %v1545_v32 }
 0x105   :  { %547 = vrot.lane.b32.xlu1 %v486_v51, %s1145_s27  ;;  %v924_v3 = vpop.permute.xlu0 %923  ;;  %v930_v25 = vpop.permute.xlu1 %929  ;;  %v858_v16 = vmax.f32 %v850_v44, 0.0 }
 0x107   :  { %561 = vrot.lane.b32.xlu0 %v501_v40, %s1145_s27  ;;  %v949_v32 = vmax.f32 %v858_v16, %v928_v7  ;;  %v856_v40 = vmax.f32 %v848_v20, 0.0  ;;  %v854_v7 = vadd.f32 %v1576_v48, %v1567_v4  ;;  %v861_v20 = vmax.f32 %v853_v31, 0.0 }
 0x109   :  { %386 = vrot.lane.b32.xlu1 %v322_v55, %s1142_s28  ;;  %v932_v26 = vpop.permute.xlu0 %931  ;;  %v862_v12 = vmax.f32 %v854_v7, 0.0 }
 0x10b   :  { %v934_v59 = vpop.permute.xlu1 %933  ;;  %555 = vrot.lane.b32.xlu0 %v493_v2, %s1145_s27 }
 0x10c   :  { %v952_v4 = vmax.f32 %v861_v20, %v934_v59 }
 0x10d   :  { %569 = vrot.lane.b32.xlu1 %v508_v0, %s1145_s27  ;;  %v936_v51 = vpop.permute.xlu0 %935  ;;  %v852_v0 = vadd.f32 %v1576_v48, %v1558_v50  ;;  %v237_v50 = vadd.f32 %v1708_v21, %v1316_v36  ;;  %v249_v36 = vadd.f32 %v1723_v49, %v1345_v47  ;;  %v863_v48 = vmax.f32 %v855_v60, 0.0 }
 0x10e   :  { %v953_v23 = vmax.f32 %v862_v12, %v936_v51  ;;  %v235_v47 = vadd.f32 %v1624_v37, %v1182_v1  ;;  %v256_v49 = vadd.f32 %v1741_v39, %v1411_v28  ;;  %v996_v1 = vld [vmem:[%s2261_s3] sm:$0x3]  ;;  %v2332_v39 = vld [vmem:[#allocation7_spill] sm:$0xff] }
 0x10f   :  { %v938_v55 = vpop.permute.xlu1 %937  ;;  %563 = vrot.lane.b32.xlu0 %v500_v38, %s1145_s27  ;;  %v947_v38 = vmax.f32 %v856_v40, %v924_v3  ;;  %v860_v44 = vmax.f32 %v852_v0, 0.0  ;;  %v2331_v28 = vld [vmem:[#allocation2_spill] sm:$0xff] }
 0x110   :  { %v954_v59 = vmax.f32 %v863_v48, %v938_v55  ;;  %v241_v31 = vadd.f32 %v2332_v39, %v2331_v28 }
 0x111   :  { %571 = vrot.lane.b32.xlu1 %v507_v14, %s1145_s27  ;;  %v1949_v2 = vpop.permute.xlu0 %169  ;;  %v950_v14 = vmax.f32 %v859_v62, %v930_v25  ;;  %v951_v3 = vmax.f32 %v860_v44, %v932_v26  ;;  %v242_v25 = vadd.f32 %v1706_v6, %v1332_v42  ;;  %v1146_v26 = vmov 0.0  }
 0x112   :  { %1117 = vmatprep.subr.mxu0 %v1146_v26  ;;  %v255_v42 = vadd.f32 %v1721_v54, %v1216_v11  ;;  %1119 = vmatprep.mubr.msk.f32.mxu0 %vm1147_vm4, %v1146_v26  ;;  %v236_v11 = vadd.f32 %v1622_v9, %v1311_v35  ;;  %v420_v54 = vadd.f32 %v1739_v13, %v235_v47  ;;  %v1131_v35 = vld [vmem:[%s2259_s0 + $0x60] sm:$0xff] }
 0x113   :  { %v1953_v15 = vpop.permute.xlu1 %183  ;;  %965 = vrot.lane.b32.xlu0 %v948_v19, %s1142_s28  ;;  %v2333_v9 = vld [vmem:[#allocation6_spill] sm:$0xff] }
 0x114   :  { %v247_v13 = vadd.f32 %v1131_v35, %v2333_v9  ;;  %v246_v9 = vadd.f32 %v1800_v46, %v1358_v52  ;;  %v1133_v52 = vld [vmem:[%s2259_s0 + $0xc0] sm:$0xff] }
 0x115   :  { %967 = vrot.lane.b32.xlu1 %v949_v32, %s1142_s28  ;;  %v1959_v27 = vpop.permute.xlu0 %195  ;;  %v259_v46 = vadd.f32 %v1133_v52, %v1826_v33 }
 0x117   :  { %v1963_v24 = vpop.permute.xlu1 %197  ;;  %963 = vrot.lane.b32.xlu0 %v947_v38, %s1142_s28  ;;  %v1148_v38 = vmov 0  }
 0x118   :  { %1130 = vset.pattern.permute.xlu0 %v1148_v38 }
 0x119   :  { %969 = vrot.lane.b32.xlu1 %v950_v14, %s1142_s28  ;;  %v329_v16 = vpop.permute.xlu0 %328  ;;  %v421_v14 = vadd.f32 %v1763_v22, %v236_v11 }
 0x11a   :  { %v1973_v19 = vadd.f32 %v329_v16, %v237_v50  ;;  %v2334_v50 = vld [vmem:[#allocation12_spill] sm:$0xff] }
 0x11b   :  { %v339_v32 = vpop.permute.xlu1 %338  ;;  %971 = vrot.lane.b32.xlu0 %v951_v3, %s1142_s28  ;;  %v426_v3 = vadd.f32 %v2334_v50, %v241_v31  ;;  %v2335_v16 = vld [vmem:[#allocation4_spill] sm:$0xff] }
 0x11c   :  { %v1978_v21 = vadd.f32 %v339_v32, %v242_v25  ;;  %v2336_v25 = vld [vmem:[#allocation8_spill] sm:$0xff]  ;;  %v2337_v32 = vld [vmem:[#allocation14_spill] sm:$0xff] }
 0x11d   :  { %973 = vrot.lane.b32.xlu1 %v952_v4, %s1142_s28  ;;  %v353_v40 = vpop.permute.xlu0 %352  ;;  %v248_v4 = vadd.f32 %v2336_v25, %v2335_v16 }
 0x11e   :  { %v1983_v6 = vadd.f32 %v353_v40, %v249_v36  ;;  %v432_v36 = vadd.f32 %v2337_v32, %v247_v13  ;;  %v2338_v40 = vld [vmem:[#allocation13_spill] sm:$0xff]  ;;  %v260_v32 = vadd.f32 %v1824_v45, %v1486_v63 }
 0x11f   :  { %v365_v0 = vpop.permute.xlu1 %364  ;;  %975 = vrot.lane.b32.xlu0 %v953_v23, %s1142_s28 }
 0x120   :  { %v1990_v51 = vadd.f32 %v365_v0, %v255_v42  ;;  %v433_v42 = vadd.f32 %v2338_v40, %v248_v4  ;;  %v2341_v4 = vld [vmem:[#allocation9_spill] sm:$0xff]  ;;  %v2343_v40 = vld [vmem:[#allocation16_spill] sm:$0xff] }
 0x121   :  { %977 = vrot.lane.b32.xlu1 %v954_v59, %s1142_s28  ;;  %v367_v62 = vpop.permute.xlu0 %366 }
 0x122   :  { %v1996_v55 = vadd.f32 %v367_v62, %v256_v49 }
 0x123   :  { %v510_v37 = vpop.permute.xlu1 %509  ;;  %999 = vperm.xlu0 %1130, %v996_v1  }
 0x124   :  { %v605_v44 = vadd.f32 %v510_v37, %v420_v54 }
 0x125   :  { %v512_v7 = vpop.permute.xlu0 %511 }
 0x126   :  { %v643_v20 = vadd.f32 %v1249_v18, %v605_v44  ;;  %v606_v60 = vadd.f32 %v512_v7, %v421_v14  ;;  %v2031_v14 = vld [vmem:[%s2260_s1] ss:$0 sm:$0xff]  ;;  %v2339_v7 = vmax.f32 %v1819_v41, %v1816_v57 }
 0x127   :  { %v522_v12 = vpop.permute.xlu1 %521 }
 0x128   :  { %v675_v22 = vmax.f32 %v643_v20, 0.0  ;;  %v644_v26 = vadd.f32 %v1249_v18, %v606_v60  ;;  %v611_v23 = vadd.f32 %v522_v12, %v426_v3  ;;  %v253_v3 = vadd.f32 %v1798_v43, %v1376_v58  ;;  %v2340_v43 = vld [vmem:[#allocation3_spill] sm:$0xff] }
 0x129   :  { %v534_v48 = vpop.permute.xlu0 %533  ;;  %v245_v12 = vadd.f32 %v2341_v4, %v2340_v43 }
 0x12a   :  { %v676_v59 = vmax.f32 %v644_v26, 0.0  ;;  %v649_v0 = vadd.f32 %v1249_v18, %v611_v23  ;;  %v617_v47 = vadd.f32 %v534_v48, %v432_v36  ;;  %v2017_v49 = vsel %vm707_vm3, %v675_v22, -inf  ;;  %v1134_v26 = vld [vmem:[%s2259_s0 + $0x80] sm:$0xff]  ;;  %v2342_v23 = vld [vmem:[#allocation11_spill] sm:$0xff] }
 0x12b   :  { %v536_v62 = vpop.permute.xlu1 %535  ;;  %v251_v48 = vadd.f32 %v1134_v26, %v2342_v23  ;;  %v430_v33 = vadd.f32 %v2343_v40, %v245_v12 }
 0x12c   :  { %v2020_v11 = vsel %vm707_vm3, %v676_v59, -inf  ;;  %v681_v54 = vmax.f32 %v649_v0, 0.0  ;;  %v655_v38 = vadd.f32 %v1249_v18, %v617_v47  ;;  %v618_v1 = vadd.f32 %v536_v62, %v433_v42  ;;  %v2344_v0 = vld [vmem:[#allocation5_spill] sm:$0xff]  ;;  %v2345_v47 = vld [vmem:[#allocation10_spill] sm:$0xff] }
 0x12d   :  { %v710_v37 = vmax.f32 %v2017_v49, %v2020_v11  ;;  %v2025_v28 = vpop.permute.xlu0 %177  ;;  %v252_v62 = vadd.f32 %v2345_v47, %v2344_v0 }
 0x12e   :  { %v725_v39 = vsel %vm707_vm3, %v681_v54, -inf  ;;  %v687_v31 = vmax.f32 %v655_v38, 0.0  ;;  %v656_v44 = vadd.f32 %v2031_v14, %v618_v1  ;;  %v2346_v54 = vld [vmem:[#allocation15_spill] sm:$0xff] }
 0x12f   :  { %v2037_v18 = vmax.f32 %v2339_v7, %v725_v39  ;;  %v2039_v35 = vpop.permute.xlu1 %191  ;;  %v436_v38 = vadd.f32 %v2346_v54, %v251_v48  ;;  %v437_v1 = vadd.f32 %v1858_v8, %v252_v62 }
 0x130   :  { %v688_v13 = vmax.f32 %v656_v44, 0.0  ;;  %v2046_v20 = vsel %vm707_vm3, %v687_v31, -inf }
 0x131   :  { %v347_v50 = vpop.permute.xlu0 %346 }
 0x132   :  { %v2049_v60 = vsel %vm707_vm3, %v688_v13, -inf  ;;  %v2051_v16 = vadd.f32 %v347_v50, %v246_v9 }
 0x133   :  { %v750_v41 = vmax.f32 %v2046_v20, %v2049_v60  ;;  %v361_v57 = vpop.permute.xlu1 %360 }
 0x134   :  { %v2059_v25 = vadd.f32 %v361_v57, %v253_v3 }
 0x135   :  { %v373_v58 = vpop.permute.xlu0 %372 }
 0x136   :  { %v2065_v36 = vadd.f32 %v373_v58, %v259_v46 }
 0x137   :  { %v375_v22 = vpop.permute.xlu1 %374 }
 0x138   :  { %v2072_v42 = vadd.f32 %v375_v22, %v260_v32 }
 0x139   :  { %v530_v59 = vpop.permute.xlu0 %529 }
 0x13a   :  { %v615_v63 = vadd.f32 %v530_v59, %v430_v33 }
 0x13b   :  { %v542_v45 = vpop.permute.xlu1 %541 }
 0x13c   :  { %v653_v39 = vadd.f32 %v2031_v14, %v615_v63  ;;  %v621_v31 = vadd.f32 %v542_v45, %v436_v38 }
 0x13d   :  { %v544_v44 = vpop.permute.xlu0 %543 }
 0x13e   :  { %v685_v7 = vmax.f32 %v653_v39, 0.0  ;;  %v659_v9 = vadd.f32 %v2031_v14, %v621_v31  ;;  %v622_v13 = vadd.f32 %v544_v44, %v437_v1 }
 0x13f   :  { %v2080_v50 = vpop.permute.xlu1 %185 }
 0x140   :  { %v738_v3 = vsel %vm707_vm3, %v685_v7, -inf  ;;  %v691_v57 = vmax.f32 %v659_v9, 0.0  ;;  %v660_v52 = vadd.f32 %v2031_v14, %v622_v13 }
 0x141   :  { %v739_v46 = vmax.f32 %v737_v29, %v738_v3  ;;  %v2087_v8 = vpop.permute.xlu0 %199 }
 0x142   :  { %v692_v58 = vmax.f32 %v660_v52, 0.0  ;;  %v761_v4 = vsel %vm707_vm3, %v691_v57, -inf }
 0x143   :  { %v2089_v43 = vpop.permute.xlu1 %330 }
 0x144   :  { %v762_v12 = vsel %vm707_vm3, %v692_v58, -inf }
 0x145   :  { %v763_v32 = vmax.f32 %v761_v4, %v762_v12  ;;  %v2093_v22 = vpop.permute.xlu0 %354 }
 0x147   :  { %v2095_v26 = vpop.permute.xlu1 %368 }
 0x149   :  { %v2097_v23 = vpop.permute.xlu0 %380 }
 0x14b   :  { %v2099_v48 = vpop.permute.xlu1 %382 }
 0x14d   :  { %v514_v10 = vpop.permute.xlu0 %513 }
 0x14e   :  { %v607_v34 = vadd.f32 %v514_v10, %v1973_v19 }
 0x14f   :  { %v524_v29 = vpop.permute.xlu1 %523 }
 0x150   :  { %v645_v40 = vadd.f32 %v2031_v14, %v607_v34  ;;  %v612_v33 = vadd.f32 %v524_v29, %v1978_v21 }
 0x151   :  { %v538_v59 = vpop.permute.xlu0 %537 }
 0x152   :  { %v677_v0 = vmax.f32 %v645_v40, 0.0  ;;  %v650_v47 = vadd.f32 %v2031_v14, %v612_v33  ;;  %v619_v62 = vadd.f32 %v538_v59, %v1983_v6 }
 0x153   :  { %v550_v54 = vpop.permute.xlu1 %549 }
 0x154   :  { %v711_v38 = vsel %vm707_vm3, %v677_v0, -inf  ;;  %v682_v63 = vmax.f32 %v650_v47, 0.0  ;;  %v657_v45 = vadd.f32 %v2031_v14, %v619_v62  ;;  %v625_v19 = vadd.f32 %v550_v54, %v1990_v51 }
 0x155   :  { %v2112_v1 = vmax.f32 %v710_v37, %v711_v38  ;;  %v552_v21 = vpop.permute.xlu0 %551 }
 0x156   :  { %v727_v39 = vsel %vm713_vm5, %v682_v63, -inf  ;;  %v689_v31 = vmax.f32 %v657_v45, 0.0  ;;  %v663_v6 = vadd.f32 %v2031_v14, %v625_v19  ;;  %v626_v44 = vadd.f32 %v552_v21, %v1996_v55 }
 0x157   :  { %v2118_v7 = vmax.f32 %v2037_v18, %v727_v39  ;;  %v2120_v9 = vpop.permute.xlu1 %193 }
 0x158   :  { %v751_v51 = vsel %vm707_vm3, %v689_v31, -inf  ;;  %v695_v13 = vmax.f32 %v663_v6, 0.0  ;;  %v664_v49 = vadd.f32 %v2031_v14, %v626_v44 }
 0x159   :  { %v2127_v11 = vmax.f32 %v750_v41, %v751_v51  ;;  %v2129_v37 = vpop.permute.xlu0 %362  ;;  %v1137_v51 = vld [vmem:[%s2259_s0 + $0xb0] sm:$0xff] }
 0x15a   :  { %v696_v3 = vmax.f32 %v664_v49, 0.0  ;;  %v2134_v55 = vsel %vm707_vm3, %v695_v13, -inf  ;;  %v257_v13 = vadd.f32 %v1137_v51, %v1953_v15  ;;  %v264_v15 = vadd.f32 %v1963_v24, %v1589_v56  ;;  %v1139_v56 = vld [vmem:[%s2259_s0 + $0x98] sm:$0xff] }
 0x15b   :  { %v2131_v57 = vpop.permute.xlu1 %376  ;;  %v254_v24 = vadd.f32 %v1139_v56, %v2025_v28 }
 0x15c   :  { %v2137_v18 = vsel %vm707_vm3, %v696_v3, -inf }
 0x15d   :  { %v776_v52 = vmax.f32 %v2134_v55, %v2137_v18  ;;  %v532_v58 = vpop.permute.xlu0 %531  ;;  %v439_v51 = vadd.f32 %v2129_v37, %v254_v24 }
 0x15e   :  { %v616_v4 = vadd.f32 %v532_v58, %v2051_v16  ;;  %v1138_v58 = vld [vmem:[%s2259_s0 + $0xe0] sm:$0xff] }
 0x15f   :  { %v546_v20 = vpop.permute.xlu1 %545 }
 0x160   :  { %v654_v60 = vadd.f32 %v2031_v14, %v616_v4  ;;  %v623_v41 = vadd.f32 %v546_v20, %v2059_v25  ;;  %v263_v4 = vadd.f32 %v1138_v58, %v1959_v27  ;;  %v442_v20 = vadd.f32 %v2095_v26, %v257_v13 }
 0x161   :  { %v558_v12 = vpop.permute.xlu0 %557 }
 0x162   :  { %v686_v10 = vmax.f32 %v654_v60, 0.0  ;;  %v661_v34 = vadd.f32 %v2031_v14, %v623_v41  ;;  %v629_v29 = vadd.f32 %v558_v12, %v2065_v36  ;;  %v1135_v36 = vld [vmem:[%s2259_s0 + $0x18] sm:$0xff] }
 0x163   :  { %v560_v40 = vpop.permute.xlu1 %559  ;;  %v238_v19 = vadd.f32 %v1135_v36, %v1922_v30 }
 0x164   :  { %v740_v33 = vsel %vm713_vm5, %v686_v10, -inf  ;;  %v693_v59 = vmax.f32 %v661_v34, 0.0  ;;  %v667_v0 = vadd.f32 %v2031_v14, %v629_v29  ;;  %v630_v47 = vadd.f32 %v560_v40, %v2072_v42 }
 0x165   :  { %v741_v16 = vmax.f32 %v739_v46, %v740_v33  ;;  %v2149_v62 = vpop.permute.xlu0 %201  ;;  %v1136_v46 = vld [vmem:[%s2259_s0 + $0x78] sm:$0xff]  ;;  %v449_v40 = vadd.f32 %v2099_v48, %v264_v15 }
 0x166   :  { %v764_v54 = vsel %vm707_vm3, %v693_v59, -inf  ;;  %v699_v25 = vmax.f32 %v667_v0, 0.0  ;;  %v668_v38 = vadd.f32 %v2031_v14, %v630_v47  ;;  %v250_v39 = vadd.f32 %v1136_v46, %v1949_v2 }
 0x167   :  { %v2153_v63 = vmax.f32 %v763_v32, %v764_v54  ;;  %v2155_v45 = vpop.permute.xlu1 %370  ;;  %v423_v32 = vadd.f32 %v2089_v43, %v238_v19  ;;  %v729_v43 = vrot.slane %v2118_v7, 4  ;;  %v742_v33 = vrot.slane %v741_v16, 4 }
 0x168   :  { %v700_v21 = vmax.f32 %v668_v38, 0.0  ;;  %v2169_v31 = vsel %vm707_vm3, %v699_v25, -inf  ;;  %v435_v2 = vadd.f32 %v2093_v22, %v250_v39  ;;  %v448_v22 = vadd.f32 %v2097_v23, %v263_v4  ;;  %v1140_v23 = vld [vmem:[%s2259_s0 + $0xd0] sm:$0xff] }
 0x169   :  { %v2161_v42 = vpop.permute.xlu0 %384  ;;  %v730_v27 = vmax.f32 %v2118_v7, %v729_v43  ;;  %v261_v48 = vadd.f32 %v1140_v23, %v2039_v35 }
 0x16a   :  { %v2172_v6 = vsel %vm707_vm3, %v700_v21, -inf }
 0x16b   :  { %v789_v30 = vmax.f32 %v2169_v31, %v2172_v6  ;;  %v516_v44 = vpop.permute.xlu1 %515  ;;  %v731_v28 = vrot.slane %v730_v27, 2  ;;  %v446_v58 = vadd.f32 %v2131_v57, %v261_v48 }
 0x16c   :  { %v608_v49 = vadd.f32 %v516_v44, %v423_v32  ;;  %v743_v44 = vmax.f32 %v741_v16, %v742_v33  ;;  %v258_v16 = vadd.f32 %v2080_v50, %v1583_v53  ;;  %v265_v53 = vadd.f32 %v2087_v8, %v1600_v17 }
 0x16d   :  { %v540_v3 = vpop.permute.xlu0 %539  ;;  %v266_v17 = vadd.f32 %v2149_v62, %v1759_v61 }
 0x16e   :  { %v646_v60 = vadd.f32 %v2031_v14, %v608_v49  ;;  %v620_v41 = vadd.f32 %v540_v3, %v435_v2  ;;  %v443_v50 = vadd.f32 %v2155_v45, %v258_v16 }
 0x16f   :  { %v554_v12 = vpop.permute.xlu1 %553 }
 0x170   :  { %v678_v10 = vmax.f32 %v646_v60, 0.0  ;;  %v658_v34 = vadd.f32 %v2031_v14, %v620_v41  ;;  %v627_v29 = vadd.f32 %v554_v12, %v442_v20  ;;  %v732_v20 = vmax.f32 %v730_v27, %v731_v28 }
 0x171   :  { %v566_v59 = vpop.permute.xlu0 %565  ;;  %v744_v60 = vrot.slane %v743_v44, 2 }
 0x172   :  { %v714_v26 = vsel %vm713_vm5, %v678_v10, -inf  ;;  %v690_v0 = vmax.f32 %v658_v34, 0.0  ;;  %v665_v47 = vadd.f32 %v2031_v14, %v627_v29  ;;  %v633_v54 = vadd.f32 %v566_v59, %v448_v22 }
 0x173   :  { %v715_v7 = vmax.f32 %v2112_v1, %v714_v26  ;;  %v568_v25 = vpop.permute.xlu1 %567  ;;  %v733_v59 = vrot.slane %v732_v20, 1  ;;  %v745_v27 = vmax.f32 %v743_v44, %v744_v60  ;;  %v450_v26 = vadd.f32 %v2161_v42, %v265_v53 }
 0x174   :  { %v753_v38 = vsel %vm713_vm5, %v690_v0, -inf  ;;  %v697_v36 = vmax.f32 %v665_v47, 0.0  ;;  %v671_v19 = vadd.f32 %v2031_v14, %v633_v54  ;;  %v634_v21 = vadd.f32 %v568_v25, %v449_v40 }
 0x175   :  { %v716_v46 = vrot.slane %v715_v7, 4  ;;  %v754_v39 = vmax.f32 %v2127_v11, %v753_v38  ;;  %v379_v32 = vpop.permute.xlu0 %378  ;;  %v262_v40 = vadd.f32 %v2120_v9, %v1692_v5  ;;  %v746_v38 = vrot.slane %v745_v27, 1 }
 0x176   :  { %v777_v13 = vsel %vm707_vm3, %v697_v36, -inf  ;;  %v703_v35 = vmax.f32 %v671_v19, 0.0  ;;  %v672_v1 = vadd.f32 %v2031_v14, %v634_v21  ;;  %v734_v21 = vmax.f32 %v732_v20, %v733_v59 }
 0x177   :  { %v755_v2 = vrot.slane %v754_v39, 4  ;;  %v778_v49 = vmax.f32 %v776_v52, %v777_v13  ;;  %v548_v43 = vpop.permute.xlu1 %547  ;;  %v717_v3 = vmax.f32 %v715_v7, %v716_v46  ;;  %v447_v23 = vadd.f32 %v379_v32, %v262_v40 }
 0x178   :  { %v704_v11 = vmax.f32 %v672_v1, 0.0  ;;  %v624_v4 = vadd.f32 %v548_v43, %v439_v51  ;;  %v2218_v15 = vsel %vm707_vm3, %v703_v35, -inf }
 0x179   :  { %v562_v37 = vpop.permute.xlu0 %561  ;;  %v756_v41 = vmax.f32 %v754_v39, %v755_v2  ;;  %v718_v22 = vrot.slane %v717_v3, 2 }
 0x17a   :  { %v2221_v12 = vsel %vm707_vm3, %v704_v11, -inf  ;;  %v662_v55 = vadd.f32 %v2031_v14, %v624_v4  ;;  %v631_v18 = vadd.f32 %v562_v37, %v446_v58 }
 0x17b   :  { %v802_v57 = vmax.f32 %v2218_v15, %v2221_v12  ;;  %v387_v52 = vpop.permute.xlu1 %386  ;;  %v757_v10 = vrot.slane %v756_v41, 2  ;;  %v719_v56 = vmax.f32 %v717_v3, %v718_v22 }
 0x17c   :  { %v694_v34 = vmax.f32 %v662_v55, 0.0  ;;  %v669_v29 = vadd.f32 %v2031_v14, %v631_v18  ;;  %v451_v36 = vadd.f32 %v387_v52, %v266_v17 }
 0x17d   :  { %v556_v33 = vpop.permute.xlu0 %555  ;;  %v758_v24 = vmax.f32 %v756_v41, %v757_v10  ;;  %v720_v46 = vrot.slane %v719_v56, 1 }
 0x17e   :  { %v766_v0 = vsel %vm713_vm5, %v694_v34, -inf  ;;  %v701_v47 = vmax.f32 %v669_v29, 0.0  ;;  %v628_v54 = vadd.f32 %v556_v33, %v443_v50 }
 0x17f   :  { %v767_v8 = vmax.f32 %v2153_v63, %v766_v0  ;;  %v570_v45 = vpop.permute.xlu1 %569  ;;  %v759_v39 = vrot.slane %v758_v24, 1  ;;  %v721_v4 = vmax.f32 %v719_v56, %v720_v46 }
 0x180   :  { %v790_v5 = vsel %vm707_vm3, %v701_v47, -inf  ;;  %v666_v9 = vadd.f32 %v2031_v14, %v628_v54  ;;  %v635_v48 = vadd.f32 %v570_v45, %v450_v26 }
 0x181   :  { %v768_v7 = vrot.slane %v767_v8, 4  ;;  %v791_v42 = vmax.f32 %v789_v30, %v790_v5  ;;  %v564_v25 = vpop.permute.xlu0 %563  ;;  %v747_v30 = vmax.f32 %v745_v27, %v746_v38 }
 0x182   :  { %v698_v61 = vmax.f32 %v666_v9, 0.0  ;;  %v673_v62 = vadd.f32 %v2031_v14, %v635_v48  ;;  %v632_v63 = vadd.f32 %v564_v25, %v447_v23 }
 0x183   :  { %v572_v19 = vpop.permute.xlu1 %571  ;;  %v769_v32 = vmax.f32 %v767_v8, %v768_v7 }
 0x184   :  { %v779_v28 = vsel %vm713_vm5, %v698_v61, -inf  ;;  %v705_v44 = vmax.f32 %v673_v62, 0.0  ;;  %v670_v51 = vadd.f32 %v2031_v14, %v632_v63  ;;  %v636_v13 = vadd.f32 %v572_v19, %v451_v36 }
 0x185   :  { %v780_v31 = vmax.f32 %v778_v49, %v779_v28  ;;  %v966_v6 = vpop.permute.xlu0 %965  ;;  %v770_v35 = vrot.slane %v769_v32, 2  ;;  %v760_v49 = vmax.f32 %v758_v24, %v759_v39 }
 0x186   :  { %v803_v1 = vsel %vm707_vm3, %v705_v44, -inf  ;;  %v702_v2 = vmax.f32 %v670_v51, 0.0  ;;  %v674_v43 = vadd.f32 %v2031_v14, %v636_v13  ;;  %v988_v3 = vmax.f32 %v734_v21, %v966_v6  ;;  %v995_v6 = vld [vmem:[%s2262_s2] sm:$0x3] }
 0x187   :  { %v781_v58 = vrot.slane %v780_v31, 4  ;;  %v968_v11 = vpop.permute.xlu1 %967  ;;  %v771_v16 = vmax.f32 %v769_v32, %v770_v35  ;;  %v804_v41 = vmax.f32 %v802_v57, %v803_v1 }
 0x188   :  { %v792_v37 = vsel %vm713_vm5, %v702_v2, -inf  ;;  %v706_v20 = vmax.f32 %v674_v43, 0.0  ;;  %v989_v60 = vmax.f32 %v747_v30, %v968_v11  ;;  %v1010_v22 = vrot.slane %v988_v3, 7 }
 0x189   :  { %v793_v15 = vmax.f32 %v791_v42, %v792_v37  ;;  %v964_v12 = vpop.permute.xlu0 %963  ;;  %v772_v55 = vrot.slane %v771_v16, 1  ;;  %v782_v18 = vmax.f32 %v780_v31, %v781_v58 }
 0x18a   :  { %v805_v52 = vsel %vm713_vm5, %v706_v20, -inf  ;;  %v1013_v14 = vrot.slane %v989_v60, 6  ;;  %v987_v10 = vmax.f32 %v721_v4, %v964_v12 }
 0x18b   :  { %v794_v53 = vrot.slane %v793_v15, 4  ;;  %v806_v50 = vmax.f32 %v804_v41, %v805_v52  ;;  %v970_v34 = vpop.permute.xlu1 %969  ;;  %v773_v29 = vmax.f32 %v771_v16, %v772_v55  ;;  %v783_v40 = vrot.slane %v782_v18, 2 }
 0x18c   :  { %v1012_v33 = vsel %vm1011_vm6, %v1010_v22, %v987_v10  ;;  %v990_v59 = vmax.f32 %v760_v49, %v970_v34 }
 0x18d   :  { %v807_v27 = vrot.slane %v806_v50, 4  ;;  %v1015_v57 = vsel %vm1014_vm7, %v1013_v14, %v1012_v33  ;;  %v972_v26 = vpop.permute.xlu0 %971  ;;  %v784_v0 = vmax.f32 %v782_v18, %v783_v40  ;;  %v795_v47 = vmax.f32 %v793_v15, %v794_v53 }
 0x18e   :  { %v1016_v54 = vrot.slane %v990_v59, 5  ;;  %v991_v17 = vmax.f32 %v773_v29, %v972_v26 }
 0x18f   :  { %v785_v8 = vrot.slane %v784_v0, 1  ;;  %v796_v45 = vrot.slane %v795_v47, 2  ;;  %v808_v56 = vmax.f32 %v806_v50, %v807_v27  ;;  %v974_v42 = vpop.permute.xlu1 %973 }
 0x190   :  { %v1018_v24 = vsel %vm1017_vm8, %v1016_v54, %v1015_v57  ;;  %v1019_v23 = vrot.slane %v991_v17, 4 }
 0x191   :  { %v786_v5 = vmax.f32 %v784_v0, %v785_v8  ;;  %v797_v9 = vmax.f32 %v795_v47, %v796_v45  ;;  %v809_v48 = vrot.slane %v808_v56, 2  ;;  %v976_v19 = vpop.permute.xlu0 %975 }
 0x192   :  { %v1021_v7 = vsel %vm1020_vm9, %v1019_v23, %v1018_v24 }
 0x193   :  { %v992_v25 = vmax.f32 %v786_v5, %v974_v42  ;;  %v798_v38 = vrot.slane %v797_v9, 1  ;;  %v810_v36 = vmax.f32 %v808_v56, %v809_v48  ;;  %v978_v32 = vpop.permute.xlu1 %977 }
 0x195   :  { %v1022_v61 = vrot.slane %v992_v25, 3  ;;  %v799_v62 = vmax.f32 %v797_v9, %v798_v38  ;;  %v811_v63 = vrot.slane %v810_v36, 1 }
 0x197   :  { %v1024_v21 = vsel %vm1023_vm10, %v1022_v61, %v1021_v7  ;;  %v993_v46 = vmax.f32 %v799_v62, %v976_v19  ;;  %v812_v39 = vmax.f32 %v810_v36, %v811_v63 }
 0x199   :  { %v1025_v28 = vrot.slane %v993_v46, 2  ;;  %v994_v44 = vmax.f32 %v812_v39, %v978_v32 }
 0x19b   :  { %v1028_v51 = vrot.slane %v994_v44, 1  ;;  %v1027_v13 = vsel %vm1026_vm11, %v1025_v28, %v1024_v21 }
 0x19d   :  { %v1030_v31 = vsel %vm1029_vm12, %v1028_v51, %v1027_v13 }
 0x19e   :  { %1118 = vmatpush3.xpose.msk.msra.mxu0 %vm707_vm3, %v1030_v31  ;;  %v1000_v30 = vpop.permute.xlu0 %999 }
 0x1a1   :  { %1120 = vmatmul.mubr.msk.f32.vlgmr.msra.gmra.mxu0 %vm707_vm3, %v995_v6 }
 0x261   :  { %v1102_v35 = vpop.f32.mrf.mxu0 }
 0x262   :  { %v1103_v1 = vadd.f32 %v1102_v35, %v1000_v30 }
 0x263   :  { %v1121_v2 = vpop.f32.mrf.mxu0 }
 0x264   :  { %1107 = vst.msk [vmem:[%s2263_s4] sm:$0x3] %vm1106_vm13, %v1103_v1 }

</bundles_post_ra>
